<compile_context>
chip_gen: v6e
topology: v6e:2x2x1
jax: 0.10.0
libtpu: 0.0.40
codegen_flags: <defaults>
</compile_context>

<pallas_src>
import jax
import jax.numpy as jnp
from jax.experimental import pallas as pl
from jax.experimental.pallas import tpu as pltpu


def _silu_kernel(x_ref, o_ref):
    # Compute in f32; tanh goes to the EUP slot (one push/element), the few VPU
    # muls/adds ride in the ample VALU slack of an HBM-bound kernel.
    xf = x_ref[...].astype(jnp.float32)
    sig = 0.5 * (jnp.tanh(0.5 * xf) + 1.0)  # == sigmoid(xf), single EUP op
    o_ref[...] = (xf * sig).astype(o_ref.dtype)


def _round_up(v, m):
    return (v + m - 1) // m * m


def _silu_2d(x2d, target_block_bytes):
    """Run the SiLU kernel on a lane-dense (rows, F) slab (F multiple of 128)."""
    rows, F = x2d.shape
    itemsize = jnp.dtype(x2d.dtype).itemsize
    n = rows * F

    # 32-row alignment covers sublane packing for f32 (8), bf16 (16), int8/fp8 (32).
    row_align = 32
    row_tile = max(row_align,
                   (target_block_bytes // (F * itemsize)) // row_align * row_align)
    if row_tile >= rows:
        if rows >= 2 * row_align:
            # Keep at least 2 row blocks so both v7x TensorCores get work.
            row_tile = _round_up(pl.cdiv(rows, 2), row_align)
        else:
            row_tile = rows  # tiny input: full-extent block is always legal
    grid = pl.cdiv(rows, row_tile)

    return pl.pallas_call(
        _silu_kernel,
        out_shape=jax.ShapeDtypeStruct((rows, F), x2d.dtype),
        grid=(grid,),
        in_specs=[pl.BlockSpec((row_tile, F), lambda i: (i, 0))],
        out_specs=pl.BlockSpec((row_tile, F), lambda i: (i, 0)),
        compiler_params=pltpu.CompilerParams(
            dimension_semantics=("parallel",),
            # 4 MiB blocks * (in+out) * double-buffering = ~16 MiB live; raise the
            # scoped limit so v5e's 16 MiB default does not force smaller tiles.
            vmem_limit_bytes=32 * 1024 * 1024,
        ),
        cost_estimate=pl.CostEstimate(
            flops=4 * n,
            transcendentals=n,
            bytes_accessed=2 * n * itemsize,
        ),
    )(x2d)


def silu(x, *, target_block_bytes=4 * 1024 * 1024):
    """Applies SiLU elementwise. Accepts arbitrary-rank input (like the torch module)."""
    orig_shape = x.shape
    n = x.size
    if n == 0:
        return x

    flat = x.reshape(-1)

    # Pick a lane-dense feature width F (multiple of 128) dividing the flattened
    # size so the reshape is a free view-change (no pad / extra HBM pass).
    F = None
    for cand in (16384, 8192, 4096, 2048, 1024, 512, 256, 128):
        if n % cand == 0:
            F = cand
            break

    if F is not None:
        return _silu_2d(flat.reshape(-1, F), target_block_bytes).reshape(orig_shape)

    # Rare ragged-total fallback: kernel on the 128-aligned prefix, tiny tail
    # (<128 elements) through plain XLA.  No full-tensor pad/slice round-trips.
    n_main = n - (n % 128)
    tail = flat[n_main:]
    tail_out = tail * jax.nn.sigmoid(tail)
    if n_main == 0:
        return tail_out.reshape(orig_shape)
    main_out = _silu_2d(flat[:n_main].reshape(-1, 128), target_block_bytes).reshape(-1)
    return jnp.concatenate([main_out, tail_out]).reshape(orig_shape)


if __name__ == "__main__":
    key = jax.random.PRNGKey(0)
    # small shape consistent with a llama-style hidden activation: (batch, seq, hidden)
    x = jax.random.normal(key, (2, 8, 128), dtype=jnp.float32)

    y = silu(x)
    jax.block_until_ready(y)

    # correctness check against pure-JAX reference
    y_ref = x * jax.nn.sigmoid(x)
    assert y.shape == x.shape and y.dtype == x.dtype
    assert jnp.allclose(y, y_ref, atol=1e-5, rtol=1e-5)

    # exercise the ragged-total fallback path with an odd shape
    x_odd = jax.random.normal(jax.random.PRNGKey(1), (3, 5, 7), dtype=jnp.float32)
    y_odd = silu(x_odd)
    jax.block_until_ready(y_odd)
    assert jnp.allclose(y_odd, x_odd * jax.nn.sigmoid(x_odd), atol=1e-5, rtol=1e-5)

    # exercise a bf16 input (sublane-packed dtype path)
    x_bf = jax.random.normal(jax.random.PRNGKey(2), (4, 256, 512), dtype=jnp.bfloat16)
    y_bf = silu(x_bf)
    jax.block_until_ready(y_bf)
    xf = x_bf.astype(jnp.float32)
    ref_bf = (xf * jax.nn.sigmoid(xf)).astype(jnp.bfloat16)
    assert y_bf.dtype == x_bf.dtype
    assert jnp.allclose(y_bf.astype(jnp.float32), ref_bf.astype(jnp.float32),
                        atol=2e-2, rtol=2e-2)

    print("KERNEL_OK")
</pallas_src>

<mosaic_0001>
module attributes {stable_mosaic.version = 11 : i64} {
  func.func @_silu_kernel(%arg0: i32, %arg1: memref<1x2048xf32, #tpu.memory_space<vmem>>, %arg2: memref<1x2048xf32, #tpu.memory_space<vmem>>) attributes {dimension_semantics = [#tpu.dimension_semantics<parallel>], iteration_bounds = array<i64: 1>, scalar_prefetch = 0 : i64, scratch_operands = 0 : i64, tpu.core_type = #tpu.core_type<tc>, window_params = [{transform_indices = @transform_0, window_bounds = array<i64: 1, 2048>}, {transform_indices = @transform_1, window_bounds = array<i64: 1, 2048>}]} {
    %c0 = arith.constant 0 : index
    %c0_0 = arith.constant 0 : index
    %0 = vector.load %arg1[%c0, %c0_0] : memref<1x2048xf32, #tpu.memory_space<vmem>>, vector<1x2048xf32>
    %cst = arith.constant 5.000000e-01 : f32
    %1 = vector.broadcast %cst : f32 to vector<1x2048xf32>
    %2 = arith.mulf %1, %0 : vector<1x2048xf32>
    %3 = math.tanh %2 : vector<1x2048xf32>
    %cst_1 = arith.constant 1.000000e+00 : f32
    %4 = vector.broadcast %cst_1 : f32 to vector<1x2048xf32>
    %5 = arith.addf %3, %4 : vector<1x2048xf32>
    %cst_2 = arith.constant 5.000000e-01 : f32
    %6 = vector.broadcast %cst_2 : f32 to vector<1x2048xf32>
    %7 = arith.mulf %6, %5 : vector<1x2048xf32>
    %8 = arith.mulf %0, %7 : vector<1x2048xf32>
    %c0_3 = arith.constant 0 : index
    %c0_4 = arith.constant 0 : index
    %9 = vector.load %arg2[%c0_3, %c0_4] : memref<1x2048xf32, #tpu.memory_space<vmem>>, vector<1x2048xf32>
    tpu.vector_store %arg2[%c0_3, %c0_4], %8 {strides = array<i32>} : memref<1x2048xf32, #tpu.memory_space<vmem>>, vector<1x2048xf32>,
    return
  }
  func.func @transform_0(%arg0: i32) -> (i32, i32) {
    %c0_i32 = arith.constant 0 : i32
    %c0_i32_0 = arith.constant 0 : i32
    return %arg0, %c0_i32 : i32, i32
  }
  func.func @transform_1(%arg0: i32) -> (i32, i32) {
    %c0_i32 = arith.constant 0 : i32
    %c0_i32_0 = arith.constant 0 : i32
    return %arg0, %c0_i32 : i32, i32
  }
}

</mosaic_0001>

<bundles_post_ra>
// kernel: tpu_custom_call.1
= control target key start
LH: loop header
LB: loop body
LE: loop exit
PB: predicated region body
PF: predicated region fallthrough
CT: control target
= control target key end

     0   :  { %6 = vsyncpa [#allocation3], 0  ;;  %s118_s0 = inlined_call_operand.hbm [shape: f32[1,2048], index: 0, kind: input, shape index: {}]   ;;  %s119_s1 = inlined_call_operand.hbm [shape: f32[1,2048], index: 1, kind: output, shape index: {}]  }
   0x1   :  { %7 = vsyncpa [#allocation4], 0  ;;  %s100_s6 = smov [#allocation2]  }
   0x2   :  { %s14_s7 = sshll.u32 %s100_s6, 4  ;;  %s15_s7 = int_to_ptr.vmem [resolvable:$true] %s14_s7 }
   0x3   :  { %s64_s8 = scalar_lea.vmem %s15_s7, 256  ;;  %p69_p1 = scmp.lt.s32.totalorder %s15_s7, %s15_s7 }
   0x4   :  { %p65_p0 = scmp.ne.s32.totalorder %s15_s7, %s64_s8  ;;  %p70_p2 = scmp.lt.s32.totalorder %s64_s8, %s64_s8 }
   0x6   :  { %p71_p3 = por %p70_p2, %p69_p1 }
   0x8   :  { %p72_p4 = pnand %p71_p3, %p65_p0 }
   0xa   :  { %75 = shalt.err (!%p72_p4)
}
   0xb   :  { %17 = dma.hbm_to_vmem [thread:$0]  %s118_s0, 256, %s15_s7, [#allocation3]  }
   0xc   :  { %96 = dma.done.wait [#allocation3], 256  }
   0xd   :  { %97 = vsyncadd [#allocation3], 4294967040  ;;  %v21_v0 = vld [vmem:[#allocation2] sm:$0xff]  ;;  %v22_v1 = vld [vmem:[#allocation2 + $0x8] sm:$0xff]  ;;  %s101_s11 = smov [#allocation5]  }
   0xe   :  { %v23_v2 = vmul.f32 0.5, %v21_v0  ;;  %v24_v3 = vmul.f32 0.5, %v22_v1  ;;  %s41_s12 = sshll.u32 %s101_s11, 4  ;;  %s42_s12 = int_to_ptr.vmem [resolvable:$true] %s41_s12 }
   0xf   :  { %s76_s0 = scalar_lea.vmem %s42_s12, 256  ;;  %p81_p6 = scmp.lt.s32.totalorder %s42_s12, %s42_s12 }
  0x10   :  { %52 = vtanh.f32 %v23_v2  ;;  %p77_p5 = scmp.ne.s32.totalorder %s42_s12, %s76_s0  ;;  %p82_p7 = scmp.lt.s32.totalorder %s76_s0, %s76_s0 }
  0x11   :  { %54 = vtanh.f32 %v24_v3 }
  0x12   :  { %p83_p8 = por %p82_p7, %p81_p6 }
  0x14   :  { %p84_p9 = pnand %p83_p8, %p77_p5 }
  0x1d   :  { %v53_v4 = vpop.eup %52 }
  0x1e   :  { %v55_v5 = vpop.eup %54  ;;  %v27_v6 = vadd.f32 1.0, %v53_v4 }
  0x1f   :  { %v28_v7 = vadd.f32 1.0, %v55_v5 }
  0x20   :  { %v29_v8 = vmul.f32 0.5, %v27_v6 }
  0x21   :  { %v30_v9 = vmul.f32 0.5, %v28_v7 }
  0x22   :  { %v31_v10 = vmul.f32 %v29_v8, %v21_v0 }
  0x23   :  { %v32_v11 = vmul.f32 %v30_v9, %v22_v1 }
  0x24   :  { %33 = vst [vmem:[#allocation5] sm:$0xff] %v31_v10 }
  0x25   :  { %34 = vst [vmem:[#allocation5 + $0x8] sm:$0xff] %v32_v11 }
  0x26   :  { %87 = shalt.err (!%p84_p9)
}
  0x27   :  { %44 = dma.vmem_to_hbm [thread:$0]  %s42_s12, 256, %s119_s1, [#allocation4]  }
  0x28   :  { %98 = dma.done.wait [#allocation4], 256  }
  0x29   :  { %99 = vsyncadd [#allocation4], 4294967040 }
  0x2a   :  { %48 = vsyncpa [#allocation3], 1 }
  0x2b   :  { %49 = vsyncpa [#allocation4], 1 }

</bundles_post_ra>
